<compile_context>
chip_gen: v6e
topology: v6e:2x2x1
jax: 0.10.0
libtpu: 0.0.40
codegen_flags: <defaults>
</compile_context>

<pallas_src>
import functools

import jax
import jax.numpy as jnp
from jax import lax
from jax.experimental import pallas as pl
from jax.experimental.pallas import tpu as pltpu


def _round_up(a, b):
    return ((a + b - 1) // b) * b


# ---------------------------------------------------------------------------
# Fused kernel
# ---------------------------------------------------------------------------
def _lm_head_kernel(x_ref, wd_ref, bd_ref, gamma_ref, beta_ref,
                    wv_ref, bv_ref, o_ref, h_bf16, *, eps):
    # x_ref:     [tm, H]  f32   current rows tile of features (resident over vocab axis)
    # wd_ref:    [H, H]   f32   dense weight, pre-transposed to [in, out]
    # bd_ref:    [1, H]   f32   dense bias
    # gamma_ref: [1, H]   f32   layernorm weight
    # beta_ref:  [1, H]   f32   layernorm bias
    # wv_ref:    [H, tn]  bf16  decoder weight tile, pre-transposed (streams)
    # bv_ref:    [1, tn]  f32   decoder bias tile
    # o_ref:     [tm, tn] f32   logits tile
    # h_bf16:    [tm, H]  bf16  VMEM scratch; persists across the vocab grid axis

    @pl.when(pl.program_id(1) == 0)
    def _():
        # dense: x @ W_d  (W_d already [in, out])
        h = jnp.dot(x_ref[...], wd_ref[...],
                    preferred_element_type=jnp.float32) + bd_ref[...]

        # exact GELU (torch.nn.functional.gelu default): 0.5*x*(1+erf(x/sqrt(2)))
        h = 0.5 * h * (1.0 + lax.erf(h * 0.7071067811865476))

        # LayerNorm over the hidden (last) axis, f32 math
        mean = jnp.mean(h, axis=-1, keepdims=True)
        centered = h - mean
        var = jnp.mean(centered * centered, axis=-1, keepdims=True)
        hn = centered * lax.rsqrt(var + eps) * gamma_ref[...] + beta_ref[...]

        # single bf16 cast per M-tile, reused for every vocab tile
        h_bf16[...] = hn.astype(jnp.bfloat16)

    # decoder tile: bf16 x bf16 MXU matmul, f32 accumulate
    o_ref[...] = (
        jnp.dot(h_bf16[...], wv_ref[...], preferred_element_type=jnp.float32)
        + bv_ref[...]
    )


# ---------------------------------------------------------------------------
# One-time parameter preparation (hoisted out of the per-call path)
# ---------------------------------------------------------------------------
def prepare_lm_head_params(params, *, eps=1e-5, vocab_tile=1024):
    """Transpose / cast / pad the weights once; reuse across calls."""
    assert vocab_tile % 128 == 0, "vocab_tile must be a multiple of 128"

    H = params["dense_weight"].shape[1]
    V = params["decoder_bias"].shape[0]

    tn = min(vocab_tile, _round_up(V, 128))
    Vp = _round_up(V, tn)

    wd_t = jnp.asarray(params["dense_weight"], jnp.float32).T          # [H_in, H_out]
    bd = jnp.asarray(params["dense_bias"], jnp.float32).reshape(1, H)
    gamma = jnp.asarray(params["ln_gamma"], jnp.float32).reshape(1, H)
    beta = jnp.asarray(params["ln_beta"], jnp.float32).reshape(1, H)

    wv_t = jnp.asarray(params["decoder_weight"], jnp.float32).T        # [H, V]
    if Vp != V:
        wv_t = jnp.pad(wv_t, ((0, 0), (0, Vp - V)))
    wv_t = wv_t.astype(jnp.bfloat16)                                   # [H, Vp] bf16

    bv = jnp.asarray(params["decoder_bias"], jnp.float32)
    if Vp != V:
        bv = jnp.pad(bv, (0, Vp - V))
    bv = bv.reshape(1, Vp)

    return {
        "wd_t": wd_t, "bd": bd, "gamma": gamma, "beta": beta,
        "wv_t": wv_t, "bv": bv,
        "H": H, "V": V, "Vp": Vp, "tn": tn, "eps": float(eps),
    }


# ---------------------------------------------------------------------------
# Per-call wrapper
# ---------------------------------------------------------------------------
def roberta_lm_head(features, prep, *, row_tile=512):
    """features: [B, S, H] -> logits [B, S, V] (f32)."""
    B, S, H = features.shape
    assert H == prep["H"]
    M = B * S
    V, Vp, tn, eps = prep["V"], prep["Vp"], prep["tn"], prep["eps"]

    x = features.reshape(M, H).astype(jnp.float32)

    # Balanced M tiling: ceil-split into tiles of at most row_tile rows so
    # large M yields multiple "parallel" tiles (keeps both v7x TCs busy).
    n_row_tiles = max(1, -(-M // row_tile))
    tm = _round_up(-(-M // n_row_tiles), 8)
    Mp = _round_up(M, tm)
    if Mp != M:
        x = jnp.pad(x, ((0, Mp - M), (0, 0)))
    # TODO(synk): for decode-style tiny M on v7x a separate small prologue
    # pallas_call would let the vocab axis become the parallel axis.

    grid = (Mp // tm, Vp // tn)  # M outer (parallel), vocab inner (arbitrary)

    out = pl.pallas_call(
        functools.partial(_lm_head_kernel, eps=eps),
        out_shape=jax.ShapeDtypeStruct((Mp, Vp), jnp.float32),
        grid_spec=pltpu.PrefetchScalarGridSpec(
            num_scalar_prefetch=0,
            grid=grid,
            in_specs=[
                pl.BlockSpec((tm, H), lambda i, j: (i, 0)),   # x rows tile (resident over vocab)
                pl.BlockSpec((H, H), lambda i, j: (0, 0)),    # dense weight [in, out] (resident)
                pl.BlockSpec((1, H), lambda i, j: (0, 0)),    # dense bias
                pl.BlockSpec((1, H), lambda i, j: (0, 0)),    # ln gamma
                pl.BlockSpec((1, H), lambda i, j: (0, 0)),    # ln beta
                pl.BlockSpec((H, tn), lambda i, j: (0, j)),   # decoder weight tile [H, tn] bf16 (streams)
                pl.BlockSpec((1, tn), lambda i, j: (0, j)),   # decoder bias tile
            ],
            out_specs=pl.BlockSpec((tm, tn), lambda i, j: (i, j)),
            scratch_shapes=[pltpu.VMEM((tm, H), jnp.bfloat16)],
        ),
        compiler_params=pltpu.CompilerParams(
            dimension_semantics=("parallel", "arbitrary"),
            # ~16 MiB used at tm=512/tn=1024, H=768; 48 MiB leaves headroom
            # even on v7x (64 MiB physical VMEM).
            vmem_limit_bytes=48 * 1024 * 1024,
        ),
    )(x, prep["wd_t"], prep["bd"], prep["gamma"], prep["beta"],
      prep["wv_t"], prep["bv"])

    return out[:M, :V].reshape(B, S, V)


# ---------------------------------------------------------------------------
# Pure-JAX reference (f32 everywhere) for sanity checking
# ---------------------------------------------------------------------------
def roberta_lm_head_ref(features, params, *, eps=1e-5):
    x = features @ params["dense_weight"].T + params["dense_bias"]
    x = 0.5 * x * (1.0 + lax.erf(x / jnp.sqrt(2.0)))
    mean = jnp.mean(x, axis=-1, keepdims=True)
    var = jnp.mean((x - mean) ** 2, axis=-1, keepdims=True)
    x = (x - mean) * lax.rsqrt(var + eps) * params["ln_gamma"] + params["ln_beta"]
    return x @ params["decoder_weight"].T + params["decoder_bias"]


if __name__ == "__main__":
    # Small, module-consistent shapes: batch=2, seq=8, hidden=32, vocab=520
    # (vocab deliberately NOT a multiple of 128/tile to exercise padding).
    B, S, H, V = 2, 8, 32, 520

    key = jax.random.PRNGKey(0)
    k_feat, k_dw, k_db, k_g, k_b, k_decw, k_decb = jax.random.split(key, 7)

    features = jax.random.normal(k_feat, (B, S, H), dtype=jnp.float32)

    params = {
        # nn.Linear(hidden, hidden): weight [out, in], bias [out]
        "dense_weight": jax.random.normal(k_dw, (H, H), jnp.float32) * 0.05,
        "dense_bias": jax.random.normal(k_db, (H,), jnp.float32) * 0.05,
        # LayerNorm(hidden)
        "ln_gamma": 1.0 + jax.random.normal(k_g, (H,), jnp.float32) * 0.01,
        "ln_beta": jax.random.normal(k_b, (H,), jnp.float32) * 0.01,
        # nn.Linear(hidden, vocab): weight [vocab, hidden], bias [vocab]
        "decoder_weight": jax.random.normal(k_decw, (V, H), jnp.float32) * 0.05,
        "decoder_bias": jax.random.normal(k_decb, (V,), jnp.float32) * 0.05,
    }

    prep = prepare_lm_head_params(params, eps=1e-5)      # one-time weight prep
    out = roberta_lm_head(features, prep)
    out = jax.block_until_ready(out)

    ref = roberta_lm_head_ref(features, params)
    assert out.shape == (B, S, V)
    # bf16 decoder operands (f32 accumulate) vs. full-f32 reference.
    err = jnp.max(jnp.abs(out - ref))
    assert jnp.allclose(out, ref, atol=2e-2, rtol=2e-2), f"mismatch vs reference (max err {err})"

    print("KERNEL_OK")
</pallas_src>

<mosaic_0001>
module attributes {stable_mosaic.version = 11 : i64} {
  func.func @_lm_head_kernel(%arg0: i32, %arg1: i32, %arg2: memref<16x32xf32, #tpu.memory_space<vmem>>, %arg3: memref<32x32xf32, #tpu.memory_space<vmem>>, %arg4: memref<1x32xf32, #tpu.memory_space<vmem>>, %arg5: memref<1x32xf32, #tpu.memory_space<vmem>>, %arg6: memref<1x32xf32, #tpu.memory_space<vmem>>, %arg7: memref<32x640xbf16, #tpu.memory_space<vmem>>, %arg8: memref<1x640xf32, #tpu.memory_space<vmem>>, %arg9: memref<16x640xf32, #tpu.memory_space<vmem>>, %arg10: memref<16x32xbf16, #tpu.memory_space<vmem>>) attributes {dimension_semantics = [#tpu.dimension_semantics<parallel>, #tpu.dimension_semantics<arbitrary>], iteration_bounds = array<i64: 1, 1>, scalar_prefetch = 0 : i64, scratch_operands = 1 : i64, tpu.core_type = #tpu.core_type<tc>, window_params = [{transform_indices = @transform_0, window_bounds = array<i64: 16, 32>}, {pipeline_mode = #tpu.pipeline_mode<synchronous>, transform_indices = @transform_1, window_bounds = array<i64: 32, 32>}, {pipeline_mode = #tpu.pipeline_mode<synchronous>, transform_indices = @transform_2, window_bounds = array<i64: 1, 32>}, {pipeline_mode = #tpu.pipeline_mode<synchronous>, transform_indices = @transform_3, window_bounds = array<i64: 1, 32>}, {pipeline_mode = #tpu.pipeline_mode<synchronous>, transform_indices = @transform_4, window_bounds = array<i64: 1, 32>}, {transform_indices = @transform_5, window_bounds = array<i64: 32, 640>}, {transform_indices = @transform_6, window_bounds = array<i64: 1, 640>}, {transform_indices = @transform_7, window_bounds = array<i64: 16, 640>}]} {
    %c0_i32 = arith.constant 0 : i32
    %0 = arith.cmpi eq, %arg1, %c0_i32 : i32
    %1 = arith.extui %0 : i1 to i32
    %c0_i32_0 = arith.constant 0 : i32
    %2 = arith.cmpi ne, %1, %c0_i32_0 : i32
    scf.if %2 {
      %c0_8 = arith.constant 0 : index
      %c0_9 = arith.constant 0 : index
      %10 = vector.load %arg2[%c0_8, %c0_9] : memref<16x32xf32, #tpu.memory_space<vmem>>, vector<16x32xf32>
      %c0_10 = arith.constant 0 : index
      %c0_11 = arith.constant 0 : index
      %11 = vector.load %arg3[%c0_10, %c0_11] : memref<32x32xf32, #tpu.memory_space<vmem>>, vector<32x32xf32>
      %cst_12 = arith.constant dense<0.000000e+00> : vector<16x32xf32>
      %12 = tpu.matmul %10, %11, %cst_12 {dimension_numbers = #tpu.dot_dimension_numbers<[1], [0], [0], [1], [0, 0, 1, 1], [], []>} : vector<16x32xf32>, vector<32x32xf32>, vector<16x32xf32> -> vector<16x32xf32>
      %c0_13 = arith.constant 0 : index
      %c0_14 = arith.constant 0 : index
      %13 = vector.load %arg4[%c0_13, %c0_14] : memref<1x32xf32, #tpu.memory_space<vmem>>, vector<1x32xf32>
      %14 = vector.broadcast %13 : vector<1x32xf32> to vector<16x32xf32>
      %15 = arith.addf %12, %14 : vector<16x32xf32>
      %cst_15 = arith.constant 5.000000e-01 : f32
      %16 = vector.broadcast %cst_15 : f32 to vector<16x32xf32>
      %17 = arith.mulf %16, %15 : vector<16x32xf32>
      %cst_16 = arith.constant 0.707106769 : f32
      %18 = vector.broadcast %cst_16 : f32 to vector<16x32xf32>
      %19 = arith.mulf %15, %18 : vector<16x32xf32>
      %20 = math.erf %19 : vector<16x32xf32>
      %cst_17 = arith.constant 1.000000e+00 : f32
      %21 = vector.broadcast %cst_17 : f32 to vector<16x32xf32>
      %22 = arith.addf %21, %20 : vector<16x32xf32>
      %23 = arith.mulf %17, %22 : vector<16x32xf32>
      %cst_18 = arith.constant dense<0.000000e+00> : vector<16xf32>
      %24 = vector.multi_reduction <add>, %23, %cst_18 [1] : vector<16x32xf32> to vector<16xf32>
      %25 = vector.shape_cast %24 : vector<16xf32> to vector<16x1xf32>
      %cst_19 = arith.constant 3.200000e+01 : f32
      %26 = vector.broadcast %cst_19 : f32 to vector<16x1xf32>
      %27 = arith.divf %25, %26 : vector<16x1xf32>
      %28 = vector.broadcast %27 : vector<16x1xf32> to vector<16x32xf32>
      %29 = arith.subf %23, %28 : vector<16x32xf32>
      %30 = arith.mulf %29, %29 : vector<16x32xf32>
      %cst_20 = arith.constant dense<0.000000e+00> : vector<16xf32>
      %31 = vector.multi_reduction <add>, %30, %cst_20 [1] : vector<16x32xf32> to vector<16xf32>
      %32 = vector.shape_cast %31 : vector<16xf32> to vector<16x1xf32>
      %cst_21 = arith.constant 3.200000e+01 : f32
      %33 = vector.broadcast %cst_21 : f32 to vector<16x1xf32>
      %34 = arith.divf %32, %33 : vector<16x1xf32>
      %cst_22 = arith.constant 9.99999974E-6 : f32
      %35 = vector.broadcast %cst_22 : f32 to vector<16x1xf32>
      %36 = arith.addf %34, %35 : vector<16x1xf32>
      %37 = math.rsqrt %36 : vector<16x1xf32>
      %38 = vector.broadcast %37 : vector<16x1xf32> to vector<16x32xf32>
      %39 = arith.mulf %29, %38 : vector<16x32xf32>
      %c0_23 = arith.constant 0 : index
      %c0_24 = arith.constant 0 : index
      %40 = vector.load %arg5[%c0_23, %c0_24] : memref<1x32xf32, #tpu.memory_space<vmem>>, vector<1x32xf32>
      %41 = vector.broadcast %40 : vector<1x32xf32> to vector<16x32xf32>
      %42 = arith.mulf %39, %41 : vector<16x32xf32>
      %c0_25 = arith.constant 0 : index
      %c0_26 = arith.constant 0 : index
      %43 = vector.load %arg6[%c0_25, %c0_26] : memref<1x32xf32, #tpu.memory_space<vmem>>, vector<1x32xf32>
      %44 = vector.broadcast %43 : vector<1x32xf32> to vector<16x32xf32>
      %45 = arith.addf %42, %44 : vector<16x32xf32>
      %46 = arith.truncf %45 : vector<16x32xf32> to vector<16x32xbf16>
      %c0_27 = arith.constant 0 : index
      %c0_28 = arith.constant 0 : index
      %47 = vector.load %arg10[%c0_27, %c0_28] : memref<16x32xbf16, #tpu.memory_space<vmem>>, vector<16x32xbf16>
      tpu.vector_store %arg10[%c0_27, %c0_28], %46 {strides = array<i32>} : memref<16x32xbf16, #tpu.memory_space<vmem>>, vector<16x32xbf16>,
    } else {
    }
    %c0 = arith.constant 0 : index
    %c0_1 = arith.constant 0 : index
    %3 = vector.load %arg10[%c0, %c0_1] : memref<16x32xbf16, #tpu.memory_space<vmem>>, vector<16x32xbf16>
    %c0_2 = arith.constant 0 : index
    %c0_3 = arith.constant 0 : index
    %4 = vector.load %arg7[%c0_2, %c0_3] : memref<32x640xbf16, #tpu.memory_space<vmem>>, vector<32x640xbf16>
    %cst = arith.constant dense<0.000000e+00> : vector<16x640xf32>
    %5 = tpu.matmul %3, %4, %cst {dimension_numbers = #tpu.dot_dimension_numbers<[1], [0], [0], [1], [0, 0, 1, 1], [], []>} : vector<16x32xbf16>, vector<32x640xbf16>, vector<16x640xf32> -> vector<16x640xf32>
    %c0_4 = arith.constant 0 : index
    %c0_5 = arith.constant 0 : index
    %6 = vector.load %arg8[%c0_4, %c0_5] : memref<1x640xf32, #tpu.memory_space<vmem>>, vector<1x640xf32>
    %7 = vector.broadcast %6 : vector<1x640xf32> to vector<16x640xf32>
    %8 = arith.addf %5, %7 : vector<16x640xf32>
    %c0_6 = arith.constant 0 : index
    %c0_7 = arith.constant 0 : index
    %9 = vector.load %arg9[%c0_6, %c0_7] : memref<16x640xf32, #tpu.memory_space<vmem>>, vector<16x640xf32>
    tpu.vector_store %arg9[%c0_6, %c0_7], %8 {strides = array<i32>} : memref<16x640xf32, #tpu.memory_space<vmem>>, vector<16x640xf32>,
    return
  }
  func.func @transform_0(%arg0: i32, %arg1: i32) -> (i32, i32) {
    %c0_i32 = arith.constant 0 : i32
    %c0_i32_0 = arith.constant 0 : i32
    return %arg0, %c0_i32 : i32, i32
  }
  func.func @transform_1(%arg0: i32, %arg1: i32) -> (i32, i32) {
    %c0_i32 = arith.constant 0 : i32
    %c0_i32_0 = arith.constant 0 : i32
    %c0_i32_1 = arith.constant 0 : i32
    return %c0_i32, %c0_i32_0 : i32, i32
  }
  func.func @transform_2(%arg0: i32, %arg1: i32) -> (i32, i32) {
    %c0_i32 = arith.constant 0 : i32
    %c0_i32_0 = arith.constant 0 : i32
    %c0_i32_1 = arith.constant 0 : i32
    return %c0_i32, %c0_i32_0 : i32, i32
  }
  func.func @transform_3(%arg0: i32, %arg1: i32) -> (i32, i32) {
    %c0_i32 = arith.constant 0 : i32
    %c0_i32_0 = arith.constant 0 : i32
    %c0_i32_1 = arith.constant 0 : i32
    return %c0_i32, %c0_i32_0 : i32, i32
  }
  func.func @transform_4(%arg0: i32, %arg1: i32) -> (i32, i32) {
    %c0_i32 = arith.constant 0 : i32
    %c0_i32_0 = arith.constant 0 : i32
    %c0_i32_1 = arith.constant 0 : i32
    return %c0_i32, %c0_i32_0 : i32, i32
  }
  func.func @transform_5(%arg0: i32, %arg1: i32) -> (i32, i32) {
    %c0_i32 = arith.constant 0 : i32
    %c0_i32_0 = arith.constant 0 : i32
    return %c0_i32, %arg1 : i32, i32
  }
  func.func @transform_6(%arg0: i32, %arg1: i32) -> (i32, i32) {
    %c0_i32 = arith.constant 0 : i32
    %c0_i32_0 = arith.constant 0 : i32
    return %c0_i32, %arg1 : i32, i32
  }
  func.func @transform_7(%arg0: i32, %arg1: i32) -> (i32, i32) {
    %c0_i32 = arith.constant 0 : i32
    return %arg0, %arg1 : i32, i32
  }
}

</mosaic_0001>

<bundles_post_ra>
// kernel: tpu_custom_call.1
= control target key start
LH: loop header
LB: loop body
LE: loop exit
PB: predicated region body
PF: predicated region fallthrough
CT: control target
= control target key end

     0   :  { %12 = vsyncpa [#allocation4], 0  ;;  %s750_s0 = inlined_call_operand.hbm [shape: f32[16,32], index: 0, kind: input, shape index: {}]   ;;  %s751_s1 = inlined_call_operand.hbm [shape: f32[32,32], index: 1, kind: input, shape index: {}]   ;;  %s752_s2 = inlined_call_operand.vmem [shape: f32[1,32], index: 2, kind: input, shape index: {}]   ;;  %s753_s3 = inlined_call_operand.vmem [shape: f32[1,32], index: 3, kind: input, shape index: {}]   ;;  %s754_s4 = inlined_call_operand.vmem [shape: f32[1,32], index: 4, kind: input, shape index: {}]   ;;  %s755_s5 = inlined_call_operand.hbm [shape: bf16[32,640], index: 5, kind: input, shape index: {}]   ;;  %s756_s6 = inlined_call_operand.vmem [shape: f32[1,640], index: 6, kind: input, shape index: {}]   ;;  %s757_s7 = inlined_call_operand.hbm [shape: f32[16,640], index: 7, kind: output, shape index: {}]  }
   0x1   :  { %13 = vsyncpa [#allocation7], 0 }
   0x2   :  { %14 = vsyncpa [#allocation5], 0  ;;  %s664_s24 = smov [#allocation6]   ;;  %s665_s26 = smov [#allocation3]  }
   0x3   :  { %s32_s25 = sshll.u32 %s664_s24, 4  ;;  %s20_s27 = sshll.u32 %s665_s26, 4  ;;  %s33_s25 = int_to_ptr.vmem [resolvable:$true] %s32_s25  ;;  %s21_s27 = int_to_ptr.vmem [resolvable:$true] %s20_s27 }
   0x4   :  { %s586_s28 = scalar_lea.vmem %s33_s25, 512  ;;  %p591_p1 = scmp.lt.s32.totalorder %s33_s25, %s33_s25 }
   0x5   :  { %p587_p0 = scmp.ne.s32.totalorder %s33_s25, %s586_s28  ;;  %p592_p2 = scmp.lt.s32.totalorder %s586_s28, %s586_s28 }
   0x7   :  { %p593_p3 = por %p592_p2, %p591_p1 }
   0x9   :  { %p594_p4 = pnand %p593_p3, %p587_p0 }
   0xb   :  { %597 = shalt.err (!%p594_p4)
}
   0xc   :  { %s666_s29 = smov 128   ;;  %s667_s30 = smov 8  }
   0xd   :  { %38 = dma.hbm_to_vmem [thread:$0]  %s751_s1, 512, %s33_s25, [#allocation7], %s666_s29, %s666_s29, %s667_s30  }
   0xe   :  { %s606_s10 = scalar_lea.vmem %s21_s27, 256  ;;  %p611_p6 = scmp.lt.s32.totalorder %s21_s27, %s21_s27 }
   0xf   :  { %p607_p5 = scmp.ne.s32.totalorder %s21_s27, %s606_s10  ;;  %p612_p7 = scmp.lt.s32.totalorder %s606_s10, %s606_s10 }
  0x11   :  { %p613_p8 = por %p612_p7, %p611_p6 }
  0x13   :  { %p614_p9 = pnand %p613_p8, %p607_p5 }
  0x15   :  { %617 = shalt.err (!%p614_p9)
}
  0x16   :  { %26 = dma.hbm_to_vmem [thread:$0]  %s750_s0, 256, %s21_s27, [#allocation4], %s666_s29, %s666_s29, %s667_s30  }
  0x17   :  { %s668_s13 = smov [#allocation8]  }
  0x18   :  { %s50_s14 = sshll.u32 %s668_s13, 4  ;;  %s51_s14 = int_to_ptr.vmem [resolvable:$true] %s50_s14 }
  0x19   :  { %s626_s15 = scalar_lea.vmem %s51_s14, 1280  ;;  %p631_p11 = scmp.lt.s32.totalorder %s51_s14, %s51_s14 }
  0x1a   :  { %p627_p10 = scmp.ne.s32.totalorder %s51_s14, %s626_s15  ;;  %p632_p12 = scmp.lt.s32.totalorder %s626_s15, %s626_s15 }
  0x1c   :  { %p633_p13 = por %p632_p12, %p631_p11 }
  0x1e   :  { %p634_p0 = pnand %p633_p13, %p627_p10 }
  0x20   :  { %637 = shalt.err (!%p634_p0)
}
  0x21   :  { %s669_s1 = smov 320   ;;  %s670_s16 = smov 20  }
  0x22   :  { %56 = dma.hbm_to_vmem [thread:$0]  %s755_s5, 1280, %s51_s14, [#allocation7], %s669_s1, %s669_s1, %s670_s16  }
  0x23   :  { %658 = dma.done.wait [#allocation4], 256  }
  0x24   :  { %659 = vsyncadd [#allocation4], 4294967040 }
  0x25   :  { %660 = dma.done.wait [#allocation7], 1792  }
  0x26   :  { %661 = vsyncadd [#allocation7], 4294965504  ;;  %vm86_vm0 = vcmask 261120   ;;  %v78_v0 = vld [vmem:[#allocation6 + $0x18] sm:$0xff]  ;;  %v77_v1 = vld [vmem:[#allocation6 + $0x10] sm:$0xff]  ;;  %v671_v41 = vmov 0  }
  0x27   :  { %523 = vmatprep.subr.mxu0 %v78_v0  ;;  %v76_v2 = vld [vmem:[#allocation6 + $0x8] sm:$0xff]  ;;  %v73_v3 = vld [vmem:[#allocation3] sm:$0xff]  ;;  %v75_v4 = vld [vmem:[#allocation6] sm:$0xff]  ;;  %368 = vmatprep.mubr.bf16.mxu1 %v671_v41  ;;  %v672_v42 = vmov 0.0   ;;  %vm231_vm1 = vcmask 257024   ;;  %vm673_vm2 = vmmov 0  }
  0x28   :  { %524 = vmatpush3.msra.mxu0 %v78_v0  ;;  %531 = vmatprep.mubr.msk.f32.mxu0 %vm86_vm0, %v73_v3  ;;  %v74_v5 = vld [vmem:[#allocation3 + $0x8] sm:$0xff]  ;;  %v491_v6 = vld [vmem:[%s752_s2] ss:$0 sm:$0xff]  ;;  %v555_v33 = vld [vmem:[#allocation8 + $0x2c] ss:$20 sps:$4 sm:$0xff]   ;;  %v250_v0 = vlaneseq }
  0x29   :  { %525 = vmatprep.subr.mxu0 %v77_v1  ;;  %v560_v34 = vld [vmem:[#allocation8 + $0x34] ss:$20 sps:$4 sm:$0xff]   ;;  %v558_v36 = vld [vmem:[#allocation8 + $0x30] ss:$20 sps:$4 sm:$0xff]   ;;  %348 = vmatprep.subr.bf16.mxu1 %v555_v33  ;;  %v566_v38 = vld [vmem:[#allocation8 + $0xc] ss:$20 sps:$4 sm:$0xff]  }
  0x2a   :  { %526 = vmatpush3.msra.mxu0 %v77_v1  ;;  %v557_v35 = vld [vmem:[#allocation8 + $0x28] ss:$20 sps:$4 sm:$0xff]   ;;  %v561_v37 = vld [vmem:[#allocation8 + $0x4] ss:$20 sps:$4 sm:$0xff]   ;;  %v563_v39 = vld [vmem:[#allocation8] ss:$20 sps:$4 sm:$0xff]  }
  0x2b   :  { %527 = vmatprep.subr.mxu0 %v76_v2  ;;  %349 = vmatpush1.bf16.msra.mxu1 %v557_v35  ;;  %v564_v40 = vld [vmem:[#allocation8 + $0x8] ss:$20 sps:$4 sm:$0xff]   ;;  %v568_v61 = vld [vmem:[#allocation8 + $0x38] ss:$20 sps:$4 sm:$0xff]   ;;  %v569_v63 = vld [vmem:[#allocation8 + $0x10] ss:$20 sps:$4 sm:$0xff]  }
  0x2c   :  { %528 = vmatpush3.msra.mxu0 %v76_v2  ;;  %350 = vmatprep.subr.bf16.mxu1 %v561_v37  ;;  %v494_v50 = vld [vmem:[%s753_s3] ss:$0 sm:$0xff]  ;;  %v251_v1 = vshrl.u32 %v250_v0, 7 }
  0x2d   :  { %529 = vmatprep.subr.mxu0 %v75_v4  ;;  %v495_v52 = vld [vmem:[%s754_s4] ss:$0 sm:$0xff] }
  0x2e   :  { %530 = vmatpush3.msra.mxu0 %v75_v4  ;;  %v252_v2 = vsub.s32 0, %v251_v1  ;;  %v260_v3 = vsub.s32 2, %v251_v1  ;;  %v248_v4 = vld [vmem:[%s756_s6] sm:$0x1f]  ;;  %s674_s6 = smov [#allocation9]  }
  0x2f   :  { %532 = vmatmul.mubr.msk.f32.vlgmr.msra.gmra.mxu0 %vm86_vm0, %v74_v5  ;;  %391 = vmatprep.subr.bf16.mxu0 %v560_v34  ;;  %v256_v5 = vsub.s32 1, %v251_v1  ;;  %s478_s22 = sshll.u32 %s674_s6, 4  ;;  %s479_s22 = int_to_ptr.vmem [resolvable:$true] %s478_s22 }
  0x30   :  { %392 = vmatpush1.bf16.msra.mxu0 %v558_v36  ;;  %411 = vmatprep.mubr.bf16.mxu0 %v671_v41  ;;  %s638_s23 = scalar_lea.vmem %s479_s22, 1280  ;;  %p643_p2 = scmp.lt.s32.totalorder %s479_s22, %s479_s22 }
  0x31   :  { %393 = vmatprep.subr.bf16.mxu0 %v566_v38  ;;  %351 = vmatpush1.bf16.msra.mxu1 %v563_v39  ;;  %p639_p1 = scmp.ne.s32.totalorder %s479_s22, %s638_s23  ;;  %p644_p3 = scmp.lt.s32.totalorder %s638_s23, %s638_s23 }
  0x32   :  { %534 = vmatprep.subr.bf16.mxu1 %v672_v42 }
  0x33   :  { %p645_p4 = por %p644_p3, %p643_p2 }
  0x34   :  { %394 = vmatpush1.bf16.msra.mxu0 %v564_v40 }
  0x35   :  { %p646_p5 = pnand %p645_p4, %p639_p1 }
  0xef   :  { %v533_v7 = vpop.f32.mrf.mxu0 }
  0xf0   :  { %v165_v8 = vadd.f32 %v533_v7, %v491_v6  ;;  %v253_v7 = vrot.slane %v248_v4, %v252_v2 }
  0xf1   :  { %v159_v9 = vpop.f32.mrf.mxu0 }
  0xf2   :  { %v171_v10 = vmul.f32 0.70710677, %v165_v8  ;;  %v160_v11 = vadd.f32 %v491_v6, %v159_v9  ;;  %v169_v18 = vmul.f32 0.5, %v165_v8  ;;  %v264_v6 = vsub.s32 3, %v251_v1 }
  0xf3   :  { %v261_v8 = vrot.slane %v248_v4, %v260_v3  ;;  %v257_v9 = vrot.slane %v248_v4, %v256_v5 }
  0xf4   :  { %570 = verf.f32 %v171_v10  ;;  %v170_v12 = vmul.f32 0.70710677, %v160_v11  ;;  %v168_v15 = vmul.f32 0.5, %v160_v11  ;;  %v265_v10 = vrot.slane %v248_v4, %v264_v6 }
  0xf6   :  { %572 = verf.f32 %v170_v12 }
 0x101   :  { %v571_v13 = vpop.eup %570 }
 0x102   :  { %v175_v17 = vadd.f32 1.0, %v571_v13 }
 0x103   :  { %v573_v14 = vpop.eup %572 }
 0x104   :  { %v174_v16 = vadd.f32 1.0, %v573_v14  ;;  %v177_v21 = vmul.f32 %v175_v17, %v169_v18 }
 0x106   :  { %v176_v19 = vmul.f32 %v174_v16, %v168_v15  ;;  %v181_v22 = vsel %vm86_vm0, %v177_v21, 0.0  ;;  %v268_v15 = vsub.s32 4, %v251_v1 }
 0x108   :  { %v178_v20 = vsel %vm86_vm0, %v176_v19, 0.0 }
 0x109   :  { %179 = vadd.xlane.f32.xlu0 %v178_v20 }
 0x10d   :  { %182 = vadd.xlane.f32.xlu0 %v181_v22 }
 0x192   :  { %v180_v23 = vpop.xlane.xlu0 %179 }
 0x193   :  { %v185_v24 = vmul.f32 0.03125, %v180_v23 }
 0x195   :  { %v187_v25 = vsub.f32 %v176_v19, %v185_v24  ;;  %v269_v24 = vrot.slane %v248_v4, %v268_v15 }
 0x196   :  { %v183_v26 = vpop.xlane.xlu0 %182 }
 0x197   :  { %v186_v27 = vmul.f32 0.03125, %v183_v26  ;;  %v189_v28 = vmul.f32 %v187_v25, %v187_v25 }
 0x199   :  { %v188_v29 = vsub.f32 %v177_v21, %v186_v27  ;;  %v191_v30 = vsel %vm86_vm0, %v189_v28, 0.0 }
 0x19a   :  { %192 = vadd.xlane.f32.xlu1 %v191_v30 }
 0x19b   :  { %v190_v31 = vmul.f32 %v188_v29, %v188_v29 }
 0x19d   :  { %v194_v32 = vsel %vm86_vm0, %v190_v31, 0.0 }
 0x19e   :  { %195 = vadd.xlane.f32.xlu1 %v194_v32 }
 0x223   :  { %v193_v43 = vpop.xlane.xlu1 %192 }
 0x224   :  { %v197_v44 = vmul.f32 0.03125, %v193_v43 }
 0x226   :  { %v199_v45 = vadd.f32 1e-05, %v197_v44 }
 0x227   :  { %v196_v46 = vpop.xlane.xlu1 %195 }
 0x228   :  { %574 = vrsqrt.f32 %v199_v45  ;;  %v198_v47 = vmul.f32 0.03125, %v196_v46 }
 0x22a   :  { %v200_v48 = vadd.f32 1e-05, %v198_v47 }
 0x22c   :  { %576 = vrsqrt.f32 %v200_v48 }
 0x235   :  { %v575_v49 = vpop.eup %574 }
 0x236   :  { %v203_v51 = vmul.f32 %v575_v49, %v187_v25 }
 0x238   :  { %v212_v53 = vmul.f32 %v494_v50, %v203_v51 }
 0x239   :  { %v577_v54 = vpop.eup %576 }
 0x23a   :  { %v221_v55 = vadd.f32 %v495_v52, %v212_v53  ;;  %v204_v56 = vmul.f32 %v577_v54, %v188_v29 }
 0x23c   :  { %v512_v57 = vpack.c.bf16 %v221_v55, %v221_v55  ;;  %v213_v58 = vmul.f32 %v494_v50, %v204_v56 }
 0x23e   :  { %232 = vst.msk [vmem:[#allocation2] sm:$0xf] %vm231_vm1, %v512_v57  ;;  %v222_v59 = vadd.f32 %v495_v52, %v213_v58 }
 0x240   :  { %v513_v60 = vpack.c.bf16 %v222_v59, %v222_v59 }
 0x242   :  { %233 = vst.msk [vmem:[#allocation2 + $0x4] sm:$0xf] %vm231_vm1, %v513_v60 }
 0x249   :  { %v567_v62 = vld [vmem:[#allocation2] sm:$0xff]  }
 0x24a   :  { %509 = vmatmul.mubr.msk.bf16.vlgmr.msra.gmra.mxu1 %vm86_vm0, %v567_v62  ;;  %510 = vmatmul.mubr.msk.bf16.vlgmr.msra.gmra.mxu0 %vm86_vm0, %v567_v62 }
 0x24b   :  { %535 = vmatpush3.bf16.msra.mxu1 %v568_v61  ;;  %538 = vmatprep.mubr.msk.bf16.mxu1 %vm673_vm2, %v672_v42 }
 0x24c   :  { %536 = vmatprep.subr.bf16.mxu1 %v672_v42 }
 0x24f   :  { %537 = vmatpush3.bf16.msra.mxu1 %v569_v63 }
 0x252   :  { %539 = vmatmul.mubr.msk.bf16.vlgmr.msra.gmra.mxu1 %vm86_vm0, %v567_v62 }
 0x30a   :  { %v370_v11 = vpop.f32.mrf.mxu1  ;;  %v413_v12 = vpop.f32.mrf.mxu0 }
 0x30b   :  { %v371_v13 = vadd.f32 %v370_v11, %v253_v7  ;;  %v414_v14 = vadd.f32 %v413_v12, %v261_v8 }
 0x30c   :  { %v372_v16 = vpop.f32.mrf.mxu1  ;;  %v415_v17 = vpop.f32.mrf.mxu0 }
 0x30d   :  { %463 = vst [vmem:[#allocation9] sm:$0xff] %v371_v13  ;;  %465 = vst [vmem:[#allocation9 + $0x10] sm:$0xff] %v414_v14  ;;  %v373_v18 = vadd.f32 %v372_v16, %v257_v9  ;;  %v416_v19 = vadd.f32 %v415_v17, %v265_v10 }
 0x30e   :  { %v374_v20 = vpop.f32.mrf.mxu1  ;;  %v417_v21 = vpop.f32.mrf.mxu0 }
 0x30f   :  { %464 = vst [vmem:[#allocation9 + $0x8] sm:$0xff] %v373_v18  ;;  %466 = vst [vmem:[#allocation9 + $0x18] sm:$0xff] %v416_v19  ;;  %v375_v22 = vadd.f32 %v374_v20, %v253_v7  ;;  %v418_v23 = vadd.f32 %v417_v21, %v261_v8 }
 0x310   :  { %v376_v25 = vpop.f32.mrf.mxu1  ;;  %v419_v26 = vpop.f32.mrf.mxu0 }
 0x311   :  { %468 = vst [vmem:[#allocation9 + $0x28] sm:$0xff] %v375_v22  ;;  %470 = vst [vmem:[#allocation9 + $0x38] sm:$0xff] %v418_v23  ;;  %v377_v27 = vadd.f32 %v376_v25, %v257_v9  ;;  %v420_v28 = vadd.f32 %v419_v26, %v265_v10 }
 0x312   :  { %v456_v29 = vpop.f32.mrf.mxu1 }
 0x313   :  { %469 = vst [vmem:[#allocation9 + $0x30] sm:$0xff] %v377_v27  ;;  %471 = vst [vmem:[#allocation9 + $0x40] sm:$0xff] %v420_v28  ;;  %v457_v30 = vadd.f32 %v456_v29, %v269_v24 }
 0x314   :  { %v540_v31 = vpop.f32.mrf.mxu1 }
 0x315   :  { %467 = vst [vmem:[#allocation9 + $0x20] sm:$0xff] %v457_v30 }
 0x316   :  { %v459_v32 = vpop.f32.mrf.mxu1 }
 0x317   :  { %v460_v33 = vadd.f32 %v459_v32, %v269_v24 }
 0x318   :  { %v541_v34 = vpop.f32.mrf.mxu1 }
 0x319   :  { %472 = vst [vmem:[#allocation9 + $0x48] sm:$0xff] %v460_v33 }
 0x31a   :  { %649 = shalt.err (!%p646_p5)
}
 0x31b   :  { %s675_s24 = smov 640   ;;  %s676_s25 = smov 40  }
 0x31c   :  { %484 = dma.vmem_to_hbm [thread:$0]  %s479_s22, 1280, %s757_s7, [#allocation5], %s675_s24, %s675_s24, %s676_s25  }
 0x31d   :  { %662 = dma.done.wait [#allocation5], 1280  }
 0x31e   :  { %663 = vsyncadd [#allocation5], 4294966016 }
 0x31f   :  { %488 = vsyncpa [#allocation4], 1 }
 0x320   :  { %489 = vsyncpa [#allocation7], 1 }
 0x321   :  { %490 = vsyncpa [#allocation5], 1 }

</bundles_post_ra>
